<compile_context>
chip_gen: v7x
topology: tpu7x:2x2x1
jax: 0.10.0
libtpu: 0.0.40
codegen_flags: <defaults>
</compile_context>

<pallas_src>
import functools

import jax
import jax.numpy as jnp
from jax.experimental import pallas as pl
from jax.experimental.pallas import tpu as pltpu


def _round_up(x, m):
    return (x + m - 1) // m * m


def _pick_tile(size, target, unit):
    """size is a multiple of `unit` and > target. Return (tile, padded_size).

    Prefer a full-size `target` tile when padding size up to a tile multiple adds
    <= 12.5% extra work; otherwise pick the largest unit-multiple <= target that
    divides `size` exactly (no extra padding, possibly smaller tile).
    """
    pad_size = _round_up(size, target)
    if (pad_size - size) * 8 <= size:
        return target, pad_size
    t = (target // unit) * unit
    while t > unit and size % t:
        t -= unit
    return t, size


# ----------------------------- kernels ------------------------------------- #

def _mlp_kernel_single_k(x_ref, w_ref, b_ref, o_ref, *, activation, relu):
    # x_ref: (tm, K)   w_ref: (K, tn)   b_ref: (1, tn)   o_ref: (tm, tn)
    y = jnp.dot(x_ref[...], w_ref[...], preferred_element_type=jnp.float32)
    y = y + b_ref[...].astype(jnp.float32)
    if activation:
        y = jnp.maximum(y, 0.0) if relu else jax.nn.sigmoid(y)
    o_ref[...] = y.astype(o_ref.dtype)


def _mlp_kernel_multi_k(x_ref, w_ref, b_ref, o_ref, acc_ref, *, activation, relu):
    # x_ref: (tm, tk)  w_ref: (tk, tn)  b_ref: (1, tn)  o_ref: (tm, tn)
    # acc_ref: (tm, tn) f32 scratch, resident across the K grid axis.
    k = pl.program_id(2)

    @pl.when(k == 0)
    def _():
        acc_ref[...] = jnp.zeros_like(acc_ref)

    acc_ref[...] += jnp.dot(x_ref[...], w_ref[...],
                            preferred_element_type=jnp.float32)

    @pl.when(k == pl.num_programs(2) - 1)
    def _():
        y = acc_ref[...] + b_ref[...].astype(jnp.float32)
        if activation:
            y = jnp.maximum(y, 0.0) if relu else jax.nn.sigmoid(y)
        o_ref[...] = y.astype(o_ref.dtype)


# ----------------------------- wrapper -------------------------------------- #

def mlp_forward(x, weight, bias, *, activation=True, relu=True,
                tm=512, tn=512, tk=512):
    """Pallas equivalent of MLP.forward (nn.Linear + optional ReLU/Sigmoid).

    x:      (..., Cin)
    weight: (Cout, Cin)   -- PyTorch nn.Linear layout
    bias:   (Cout,)
    returns (..., Cout) in x.dtype
    """
    lead_shape = x.shape[:-1]
    Cin = x.shape[-1]
    Cout, Cin_w = weight.shape
    assert Cin == Cin_w, "weight shape mismatch"
    assert bias.shape == (Cout,)

    x2 = x.reshape(-1, Cin)
    B = x2.shape[0]

    # Matching dtypes so the MXU does not silently take the slow mixed/f32 path.
    weight = weight.astype(x.dtype)
    bias = bias.astype(x.dtype)

    # One-time HBM transpose: kernel contracts the sublane dim of W directly.
    wT = weight.T  # (Cin, Cout)

    # ---- tile / pad selection (pad only to 8 / 128, never to tile multiples
    #      unless the overhead is tiny; full-dim blocks need no padding at all).
    tm = max(8, (tm // 8) * 8)
    tn = max(128, (tn // 128) * 128)
    tk = max(128, (tk // 128) * 128)

    if B <= tm:
        tm_eff, Bp = B, B
    else:
        tm_eff, Bp = _pick_tile(_round_up(B, 8), tm, 8)

    if Cout <= tn:
        tn_eff, Coutp = Cout, Cout
    else:
        tn_eff, Coutp = _pick_tile(_round_up(Cout, 128), tn, 128)

    if Cin <= tk:
        single_k = True
        tk_eff, Cinp = Cin, Cin
    else:
        single_k = False
        tk_eff, Cinp = _pick_tile(_round_up(Cin, 128), tk, 128)

    # ---- zero padding (padded K columns contribute 0; padded rows/cols sliced).
    xp = x2
    if Bp != B or Cinp != Cin:
        xp = jnp.pad(x2, ((0, Bp - B), (0, Cinp - Cin)))
    wTp = wT
    if Cinp != Cin or Coutp != Cout:
        wTp = jnp.pad(wT, ((0, Cinp - Cin), (0, Coutp - Cout)))
    bp = bias if Coutp == Cout else jnp.pad(bias, (0, Coutp - Cout))
    bp = bp.reshape(1, Coutp)

    gm, gn, gk = Bp // tm_eff, Coutp // tn_eff, Cinp // tk_eff

    if single_k:
        kernel = functools.partial(_mlp_kernel_single_k,
                                   activation=activation, relu=relu)
        grid = (gm, gn)
        in_specs = [
            pl.BlockSpec((tm_eff, Cinp), lambda i, j: (i, 0)),   # x tile
            pl.BlockSpec((Cinp, tn_eff), lambda i, j: (0, j)),   # W^T tile
            pl.BlockSpec((1, tn_eff), lambda i, j: (0, j)),      # bias tile
        ]
        out_specs = pl.BlockSpec((tm_eff, tn_eff), lambda i, j: (i, j))
        scratch_shapes = []
        dim_sem = ("parallel", "parallel")
    else:
        kernel = functools.partial(_mlp_kernel_multi_k,
                                   activation=activation, relu=relu)
        grid = (gm, gn, gk)
        in_specs = [
            pl.BlockSpec((tm_eff, tk_eff), lambda i, j, k: (i, k)),   # x tile
            pl.BlockSpec((tk_eff, tn_eff), lambda i, j, k: (k, j)),   # W^T tile
            pl.BlockSpec((1, tn_eff), lambda i, j, k: (0, j)),        # bias tile
        ]
        out_specs = pl.BlockSpec((tm_eff, tn_eff), lambda i, j, k: (i, j))
        scratch_shapes = [pltpu.VMEM((tm_eff, tn_eff), jnp.float32)]
        dim_sem = ("parallel", "parallel", "arbitrary")

    itemsize = jnp.dtype(x.dtype).itemsize
    cost = pl.CostEstimate(
        flops=2 * Bp * Cinp * Coutp,
        transcendentals=(Bp * Coutp) if (activation and not relu) else 0,
        bytes_accessed=(gn * Bp * Cinp * itemsize       # x re-read per N tile
                        + gm * Cinp * Coutp * itemsize  # W re-read per M tile
                        + gm * Coutp * itemsize         # bias re-read per M tile
                        + Bp * Coutp * itemsize),       # output write
    )

    out = pl.pallas_call(
        kernel,
        out_shape=jax.ShapeDtypeStruct((Bp, Coutp), x.dtype),
        grid_spec=pltpu.PrefetchScalarGridSpec(
            num_scalar_prefetch=0,
            grid=grid,
            in_specs=in_specs,
            out_specs=out_specs,
            scratch_shapes=scratch_shapes,
        ),
        compiler_params=pltpu.CompilerParams(dimension_semantics=dim_sem),
        cost_estimate=cost,
    )(xp, wTp, bp)

    if Bp != B or Coutp != Cout:
        out = out[:B, :Cout]
    return out.reshape(*lead_shape, Cout)


# ----------------------------- reference / test ----------------------------- #

def _reference(x, weight, bias, *, activation=True, relu=True):
    y = x @ weight.T + bias
    if activation:
        y = jnp.maximum(y, 0.0) if relu else jax.nn.sigmoid(y)
    return y


def _run_case(key, B, Cin, Cout, *, activation, relu, tm=512, tn=512, tk=512,
              tol=1e-4):
    k_x, k_w, k_b = jax.random.split(key, 3)
    x = jax.random.normal(k_x, (B, Cin), dtype=jnp.float32)
    bound = 1.0 / (Cin ** 0.5)
    weight = jax.random.uniform(k_w, (Cout, Cin), minval=-bound, maxval=bound,
                                dtype=jnp.float32)
    bias = jax.random.uniform(k_b, (Cout,), minval=-bound, maxval=bound,
                              dtype=jnp.float32)
    out = mlp_forward(x, weight, bias, activation=activation, relu=relu,
                      tm=tm, tn=tn, tk=tk)
    out = jax.block_until_ready(out)
    ref = _reference(x, weight, bias, activation=activation, relu=relu)
    ok = out.shape == (B, Cout)
    ok = ok and bool(jnp.allclose(out, ref, atol=tol, rtol=tol))
    return ok


if __name__ == "__main__":
    key = jax.random.PRNGKey(0)
    keys = jax.random.split(key, 8)

    ok = True

    # 1) Small, module-consistent shapes (single-tile / single-K fast path).
    batch, input_channels, output_channels = 8, 32, 64
    for i, (activation, relu) in enumerate([(True, True), (True, False),
                                            (False, True)]):
        ok = ok and _run_case(keys[i], batch, input_channels, output_channels,
                              activation=activation, relu=relu)

    # 2) Multi-tile + multi-K reduction path (forced small tiles): validates the
    #    f32 accumulator and pl.when init/finalize on a (3, 2, 3) grid.
    ok = ok and _run_case(keys[3], 96, 384, 256, activation=True, relu=True,
                          tm=32, tn=128, tk=128)
    ok = ok and _run_case(keys[4], 96, 384, 256, activation=True, relu=False,
                          tm=32, tn=128, tk=128)

    assert ok
    print("KERNEL_OK")
</pallas_src>

<mosaic_0001>
module attributes {stable_mosaic.version = 11 : i64} {
  func.func @_mlp_kernel_single_k(%arg0: i32, %arg1: i32, %arg2: memref<8x32xf32, #tpu.memory_space<vmem>>, %arg3: memref<32x64xf32, #tpu.memory_space<vmem>>, %arg4: memref<1x64xf32, #tpu.memory_space<vmem>>, %arg5: memref<8x64xf32, #tpu.memory_space<vmem>>) attributes {dimension_semantics = [#tpu.dimension_semantics<parallel>, #tpu.dimension_semantics<parallel>], iteration_bounds = array<i64: 1, 1>, scalar_prefetch = 0 : i64, scratch_operands = 0 : i64, tpu.core_type = #tpu.core_type<tc>, window_params = [{transform_indices = @transform_0, window_bounds = array<i64: 8, 32>}, {transform_indices = @transform_1, window_bounds = array<i64: 32, 64>}, {transform_indices = @transform_2, window_bounds = array<i64: 1, 64>}, {transform_indices = @transform_3, window_bounds = array<i64: 8, 64>}]} {
    %c0 = arith.constant 0 : index
    %c0_0 = arith.constant 0 : index
    %0 = vector.load %arg2[%c0, %c0_0] : memref<8x32xf32, #tpu.memory_space<vmem>>, vector<8x32xf32>
    %c0_1 = arith.constant 0 : index
    %c0_2 = arith.constant 0 : index
    %1 = vector.load %arg3[%c0_1, %c0_2] : memref<32x64xf32, #tpu.memory_space<vmem>>, vector<32x64xf32>
    %cst = arith.constant dense<0.000000e+00> : vector<8x64xf32>
    %2 = tpu.matmul %0, %1, %cst {dimension_numbers = #tpu.dot_dimension_numbers<[1], [0], [0], [1], [0, 0, 1, 1], [], []>} : vector<8x32xf32>, vector<32x64xf32>, vector<8x64xf32> -> vector<8x64xf32>
    %c0_3 = arith.constant 0 : index
    %c0_4 = arith.constant 0 : index
    %3 = vector.load %arg4[%c0_3, %c0_4] : memref<1x64xf32, #tpu.memory_space<vmem>>, vector<1x64xf32>
    %4 = vector.broadcast %3 : vector<1x64xf32> to vector<8x64xf32>
    %5 = arith.addf %2, %4 : vector<8x64xf32>
    %cst_5 = arith.constant 0.000000e+00 : f32
    %6 = vector.broadcast %cst_5 : f32 to vector<8x64xf32>
    %7 = arith.maximumf %5, %6 : vector<8x64xf32>
    %c0_6 = arith.constant 0 : index
    %c0_7 = arith.constant 0 : index
    %8 = vector.load %arg5[%c0_6, %c0_7] : memref<8x64xf32, #tpu.memory_space<vmem>>, vector<8x64xf32>
    tpu.vector_store %arg5[%c0_6, %c0_7], %7 {strides = array<i32>} : memref<8x64xf32, #tpu.memory_space<vmem>>, vector<8x64xf32>,
    return
  }
  func.func @transform_0(%arg0: i32, %arg1: i32) -> (i32, i32) {
    %c0_i32 = arith.constant 0 : i32
    %c0_i32_0 = arith.constant 0 : i32
    return %arg0, %c0_i32 : i32, i32
  }
  func.func @transform_1(%arg0: i32, %arg1: i32) -> (i32, i32) {
    %c0_i32 = arith.constant 0 : i32
    %c0_i32_0 = arith.constant 0 : i32
    return %c0_i32, %arg1 : i32, i32
  }
  func.func @transform_2(%arg0: i32, %arg1: i32) -> (i32, i32) {
    %c0_i32 = arith.constant 0 : i32
    %c0_i32_0 = arith.constant 0 : i32
    return %c0_i32, %arg1 : i32, i32
  }
  func.func @transform_3(%arg0: i32, %arg1: i32) -> (i32, i32) {
    %c0_i32 = arith.constant 0 : i32
    return %arg0, %arg1 : i32, i32
  }
}

</mosaic_0001>

<bundles_post_ra>
// kernel: tpu_custom_call.1
= control target key start
LH: loop header
LB: loop body
LE: loop exit
PB: predicated region body
PF: predicated region fallthrough
CT: control target
= control target key end

     0   :  { %8 = vsyncpa [#allocation3], 0  ;;  %s324_s0 = inlined_call_operand.hbm [shape: f32[8,32], index: 0, kind: input, shape index: {}]   ;;  %s325_s1 = inlined_call_operand.hbm [shape: f32[32,64], index: 1, kind: input, shape index: {}]   ;;  %s326_s2 = inlined_call_operand.vmem [shape: f32[1,64], index: 2, kind: input, shape index: {}]   ;;  %s327_s3 = inlined_call_operand.hbm [shape: f32[8,64], index: 3, kind: output, shape index: {}]  }
   0x1   :  { %9 = vsyncpa [#allocation6], 0 }
   0x2   :  { %10 = vsyncpa [#allocation4], 0  ;;  %s250_s12 = smov [#allocation2]   ;;  %s251_s14 = smov [#allocation5]  }
   0x3   :  { %s17_s13 = sshll.u32 %s250_s12, 4  ;;  %s26_s15 = sshll.u32 %s251_s14, 4  ;;  %s18_s13 = int_to_ptr.vmem [resolvable:$true] %s17_s13  ;;  %s278_s15 = int_to_ptr.vmem [resolvable:$true] %s26_s15 }
   0x4   :  { %s178_s18 = scalar_lea.hbm %s324_s0, 128 }
   0x5   :  { %p179_p0 = scmp.ne.s32.totalorder %s324_s0, %s178_s18  ;;  %p182_p1 = scmp.lt.u32.totalorder %s178_s18, %s324_s0 }
   0x7   :  { %p184_p2 = pnand %p182_p1, %p179_p0 }
   0x9   :  { %187 = shalt.err (!%p184_p2)
}
   0xa   :  { %s188_s23 = scalar_lea.vmem %s18_s13, 128  ;;  %p193_p4 = scmp.lt.s32.totalorder %s18_s13, %s18_s13 }
   0xb   :  { %p189_p3 = scmp.ne.s32.totalorder %s18_s13, %s188_s23  ;;  %p194_p5 = scmp.lt.s32.totalorder %s188_s23, %s188_s23 }
   0xd   :  { %p195_p6 = por %p194_p5, %p193_p4 }
   0xf   :  { %p196_p7 = pnand %p195_p6, %p189_p3 }
  0x11   :  { %199 = shalt.err (!%p196_p7)
}
  0x12   :  { %20 = dma.hbm_to_vmem [thread:$0]  %s324_s0, 128, %s18_s13, [#allocation3]  }
  0x13   :  { %s200_s28 = scalar_lea.hbm %s325_s1, 512 }
  0x14   :  { %p201_p8 = scmp.ne.s32.totalorder %s325_s1, %s200_s28  ;;  %p204_p9 = scmp.lt.u32.totalorder %s200_s28, %s325_s1 }
  0x16   :  { %p206_p10 = pnand %p204_p9, %p201_p8 }
  0x18   :  { %209 = shalt.err (!%p206_p10)
}
  0x19   :  { %s210_s6 = scalar_lea.vmem %s278_s15, 512  ;;  %p215_p12 = scmp.lt.s32.totalorder %s278_s15, %s278_s15 }
  0x1a   :  { %p211_p11 = scmp.ne.s32.totalorder %s278_s15, %s210_s6  ;;  %p216_p13 = scmp.lt.s32.totalorder %s210_s6, %s210_s6 }
  0x1c   :  { %p217_p0 = por %p216_p13, %p215_p12 }
  0x1e   :  { %p218_p1 = pnand %p217_p0, %p211_p11 }
  0x20   :  { %221 = shalt.err (!%p218_p1)
}
  0x21   :  { %s252_s0 = smov 128   ;;  %s253_s7 = smov 8  }
  0x22   :  { %32 = dma.hbm_to_vmem [thread:$0]  %s325_s1, 512, %s278_s15, [#allocation6], %s252_s0, %s252_s0, %s253_s7  }
  0x23   :  { %244 = dma.done.wait [#allocation3], 128  }
  0x24   :  { %245 = vsyncadd [#allocation3], 4294967168 }
  0x25   :  { %246 = dma.done.wait [#allocation6], 512  }
  0x26   :  { %247 = vsyncadd [#allocation6], 4294966784  ;;  %v254_v0 = vmov 0.0|0.0   ;;  %vm255_vm0 = vmmov 0   ;;  %v256_v1 = vmov 0.0   ;;  %v42_v2 = vld [vmem:[#allocation5] sm:$0xff] }
  0x27   :  { %164 = vmatprep.subr.bf16.mxu0 %v254_v0  ;;  %161 = vmatprep.mubr.msk.f32.mxu0 %vm255_vm0, %v256_v1  ;;  %v43_v3 = vld [vmem:[#allocation5 + $0x8] sm:$0xff]  ;;  %v44_v4 = vld [vmem:[#allocation5 + $0x10] sm:$0xff]  ;;  %v45_v6 = vld [vmem:[#allocation5 + $0x18] sm:$0xff]  ;;  %vm53_vm1 = vcmask 261120   ;;  %s257_s11 = smov [#allocation7]   ;;  %vm128_vm2 = vcmask 523264  }
  0x28   :  { %v165_v5 = vpack.c.bf16 %v43_v3, %v42_v2  ;;  %v168_v7 = vpack.c.bf16 %v45_v6, %v44_v4  ;;  %v41_v8 = vld [vmem:[#allocation2] sm:$0xff]  ;;  %s136_s12 = sshll.u32 %s257_s11, 4  ;;  %s137_s12 = int_to_ptr.vmem [resolvable:$true] %s136_s12 }
  0x29   :  { %v146_v9 = vld [vmem:[%s326_s2] ss:$0 sm:$0xff]  ;;  %s222_s13 = scalar_lea.vmem %s137_s12, 128  ;;  %p227_p3 = scmp.lt.s32.totalorder %s137_s12, %s137_s12 }
  0x2a   :  { %166 = vmatpush3.bf16.msra.mxu0 %v165_v5  ;;  %p223_p2 = scmp.ne.s32.totalorder %s137_s12, %s222_s13  ;;  %p228_p4 = scmp.lt.s32.totalorder %s222_s13, %s222_s13 }
  0x2b   :  { %167 = vmatprep.subr.bf16.mxu0 %v254_v0 }
  0x2c   :  { %p229_p5 = por %p228_p4, %p227_p3 }
  0x2e   :  { %169 = vmatpush3.bf16.msra.mxu0 %v168_v7  ;;  %p230_p6 = pnand %p229_p5, %p223_p2 }
  0x31   :  { %162 = vmatmul.mubr.msk.f32.vlgmr.msra.gmra.mrb[0].mxu0 %vm53_vm1, %v41_v8 }
 0x104   :  { %v123_v10 = vpop.f32.mrb[0].mxu0 }
 0x105   :  { %v124_v11 = vadd.f32 %v146_v9, %v123_v10  ;;  %v163_v12 = vpop.f32.mrb[1].mxu0 }
 0x107   :  { %v127_v13 = vmax.f32 %v124_v11, 0.0 }
 0x109   :  { %129 = vst.msk [vmem:[#allocation7] sm:$0xff] %vm128_vm2, %v127_v13 }
 0x10a   :  { %233 = shalt.err (!%p230_p6)
}
 0x10b   :  { %s234_s2 = scalar_lea.hbm %s327_s3, 128 }
 0x10c   :  { %p235_p7 = scmp.ne.s32.totalorder %s327_s3, %s234_s2  ;;  %p238_p8 = scmp.lt.u32.totalorder %s234_s2, %s327_s3 }
 0x10e   :  { %p240_p9 = pnand %p238_p8, %p235_p7 }
 0x110   :  { %243 = shalt.err (!%p240_p9)
}
 0x111   :  { %139 = dma.vmem_to_hbm [thread:$0]  %s137_s12, 128, %s327_s3, [#allocation4]  }
 0x112   :  { %248 = dma.done.wait [#allocation4], 128  }
 0x113   :  { %249 = vsyncadd [#allocation4], 4294967168 }
 0x114   :  { %143 = vsyncpa [#allocation3], 1 }
 0x115   :  { %144 = vsyncpa [#allocation6], 1 }
 0x116   :  { %145 = vsyncpa [#allocation4], 1 }

</bundles_post_ra>
